<compile_context>
chip_gen: v6e
topology: v6e:2x2x1
jax: 0.10.0
libtpu: 0.0.40
codegen_flags: <defaults>
</compile_context>

<pallas_src>
import functools

import jax
import jax.numpy as jnp
from jax.experimental import pallas as pl
from jax.experimental.pallas import tpu as pltpu

_LANES = 128  # TPU vreg lane width


# -----------------------------------------------------------------------------
# Best-effort hardware queries (failures fall back to conservative defaults).
# -----------------------------------------------------------------------------
def _num_tensorcores():
    """TensorCores sharing the 'parallel' grid axis (2 on v4/v5p/v7x, else 1)."""
    try:
        info = pltpu.get_tpu_info()
        for attr in ("num_cores", "core_count", "num_tensorcores",
                     "tensorcore_count", "cores_per_chip"):
            n = getattr(info, attr, None)
            if isinstance(n, int) and 1 <= n <= 8:
                return n
    except Exception:
        pass
    try:
        kind = jax.devices()[0].device_kind.lower()
        if any(t in kind for t in ("v4", "v5p", "v7", "7x")):
            return 2
    except Exception:
        pass
    return 1


def _vmem_budget_bytes():
    """VMEM budget used for tile selection and passed as vmem_limit_bytes."""
    cap = 64 << 20
    try:
        c = getattr(pltpu.get_tpu_info(), "vmem_capacity_bytes", None)
        if c:
            cap = int(c)
    except Exception:
        pass
    # 3/4 of physical, capped at 64 MiB: safe on v5e/v6e (128 MiB physical) and on
    # v7x (64 MiB), and well above the 16/32 MiB default scoped limits.
    return min((cap * 3) // 4, 64 << 20)


def _pick_row_tile(rows, lane_w, num_tc, vmem_budget, resident_bytes):
    """Rows per grid step along the flattened row axis.

    Targets >= ~1 MiB of HBM traffic per step (amortizes the ~0.35 us per-step
    overhead), stays inside a double-buffered VMEM budget, splits across
    TensorCores only on multi-TC chips, and prefers a tile that divides `rows`
    exactly so the wrapper never pads the input or slices the outputs.
    """
    bytes_per_row = 3 * lane_w * 4                        # x tile + two output tiles (f32)
    avail = max(64 * bytes_per_row, vmem_budget - resident_bytes)
    target = max(8, (1 << 20) // bytes_per_row)           # ~1 MiB moved per grid step
    vmem_cap = max(8, avail // (4 * bytes_per_row))       # 2x double-buffer, 2x headroom
    cap = min(target, vmem_cap)
    if num_tc >= 2 and rows >= 16:
        cap = min(cap, max(8, rows // num_tc))            # >= one block per TensorCore
    if rows <= cap or rows < 8:
        return rows                                       # single full-array block
    tm = min(max(8, (cap // 8) * 8), (rows // 8) * 8)
    if rows % tm:
        for cand in range(tm, max(7, tm // 2), -8):       # exact divisor -> no pad/slice
            if rows % cand == 0:
                return cand
        nblk = pl.cdiv(rows, tm)
        tm = min(tm, ((pl.cdiv(rows, nblk) + 7) // 8) * 8)  # minimize padded tail
    return tm


# -----------------------------------------------------------------------------
# Kernel bodies.
# -----------------------------------------------------------------------------
def _segment_max(scores, seg):
    """Max over each `seg`-wide lane segment, broadcast to every lane of its segment.

    In-segment rotate-max butterfly: pltpu.roll runs on the XLU (its own VLIW slot),
    masks are static, and the value stays lane-dense (no narrow reshape / relayout).
    `seg` is always a power of two here (it divides 128).
    """
    n = scores.shape[-1]
    ax = scores.ndim - 1
    lane = jax.lax.broadcasted_iota(jnp.int32, scores.shape, ax) % seg
    m = scores
    shift = 1
    while shift < seg:
        same = pltpu.roll(m, shift=shift, axis=ax)             # src lane j - shift
        wrap = pltpu.roll(m, shift=(shift - seg) % n, axis=ax)  # src lane j - shift + seg
        m = jnp.maximum(m, jnp.where(lane >= shift, same, wrap))
        shift *= 2
    return m


def _softmax_gate(x, scores, ones_bd, seg):
    """attn = softmax(scores) over each `seg`-lane segment; returns (x * attn, attn)."""
    if ones_bd is None:                       # plain per-row softmax (lane width == D)
        m = jnp.max(scores, axis=-1, keepdims=True)
        e = jnp.exp(scores - m)
        denom = jnp.sum(e, axis=-1, keepdims=True)
    else:                                     # per-segment softmax, fully lane-dense
        e = jnp.exp(scores - _segment_max(scores, seg))
        denom = jnp.dot(e, ones_bd, preferred_element_type=jnp.float32)  # segment sums (MXU)
    r = pl.reciprocal(denom, approx=True)     # EUP slot
    r = r * (2.0 - denom * r)                 # one Newton step restores ~f32 accuracy
    attn = e * r
    return x * attn, attn


def _attention_kernel_dense(x_ref, wt_ref, b_ref, out_ref, attn_ref):
    """One (tm, D) row tile; resident W.T; softmax over the whole last dim."""
    x = x_ref[...]
    scores = jnp.dot(x, wt_ref[...], preferred_element_type=jnp.float32) + b_ref[...]
    out, attn = _softmax_gate(x, scores, None, None)
    out_ref[...] = out.astype(out_ref.dtype)
    attn_ref[...] = attn.astype(attn_ref.dtype)


def _attention_kernel_packed(seg, x_ref, wbd_ref, ones_ref, b_ref, out_ref, attn_ref):
    """One (tm, 128) lane-packed row tile; block-diagonal W.T; per-`seg`-segment softmax."""
    x = x_ref[...]
    scores = jnp.dot(x, wbd_ref[...], preferred_element_type=jnp.float32) + b_ref[...]
    out, attn = _softmax_gate(x, scores, ones_ref[...], seg)
    out_ref[...] = out.astype(out_ref.dtype)
    attn_ref[...] = attn.astype(attn_ref.dtype)


# -----------------------------------------------------------------------------
# Wrapper.
# -----------------------------------------------------------------------------
def attention_mechanism(x, weight, bias):
    """x: [B, S, D]; weight: [D, D] ((out, in), as nn.Linear); bias: [D].

    Returns (x * softmax(x @ W.T + b, axis=-1), softmax(...)), both [B, S, D].
    """
    B, S, D = x.shape
    M = B * S
    dtype = x.dtype

    num_tc = _num_tensorcores()
    vmem_budget = _vmem_budget_bytes()

    # Lane packing: for D < 128 with 128 % D == 0, [M, D] row-major is byte-identical
    # to [M/p, 128] (p = 128/D) -> the reshape is free and every vreg/store is lane-dense.
    pack = _LANES // D if (D < _LANES and _LANES % D == 0) else 1
    if pack > 1 and M % pack != 0:
        pack = 1  # TODO(synk): pad M up to a multiple of 128//D to keep lane packing for ragged M.

    rows, lane_w = M // pack, D * pack
    x2 = x.reshape(rows, lane_w)                      # free (row-major contiguous)
    wt = weight.T.astype(dtype)                       # hoisted transpose (grid-invariant)

    if pack > 1:
        eye = jnp.eye(pack, dtype=dtype)
        w_op = jnp.kron(eye, wt)                      # (128, 128) block-diagonal W.T
        ones_bd = jnp.kron(eye, jnp.ones((D, D), dtype))  # per-segment-sum operator
        b_op = jnp.tile(bias.astype(dtype), pack).reshape(1, lane_w)
        resident = 2 * 2 * lane_w * lane_w * 4        # 2 resident operands, double-buffered
    else:
        w_op, ones_bd = wt, None
        b_op = bias.astype(dtype).reshape(1, D)
        resident = 2 * D * D * 4
        # TODO(synk): for very large D (weight ~ VMEM budget) tile the weight's output axis
        # with a second grid dimension instead of keeping the full (D, D) operand resident.

    tm = _pick_row_tile(rows, lane_w, num_tc, vmem_budget, resident)
    n_blocks = pl.cdiv(rows, tm)
    rows_pad = n_blocks * tm
    if rows_pad != rows:
        # Rare fallback (tile does not divide rows): zero rows produce softmax(bias),
        # which is finite and sliced off below.
        x2 = jnp.pad(x2, ((0, rows_pad - rows), (0, 0)))

    row_spec = pl.BlockSpec((tm, lane_w), lambda i: (i, 0))
    out_shape = (jax.ShapeDtypeStruct((rows_pad, lane_w), dtype),
                 jax.ShapeDtypeStruct((rows_pad, lane_w), dtype))
    params = pltpu.CompilerParams(dimension_semantics=("parallel",),
                                  vmem_limit_bytes=int(vmem_budget))
    # TODO(synk): emitting `attn` in bf16 would cut HBM write traffic ~25% but changes the
    # returned dtype, so it is not applied (semantics preserved).

    if pack > 1:
        kernel = functools.partial(_attention_kernel_packed, D)
        in_specs = [row_spec,
                    pl.BlockSpec((lane_w, lane_w), lambda i: (0, 0)),   # block-diag W.T
                    pl.BlockSpec((lane_w, lane_w), lambda i: (0, 0)),   # block-diag ones
                    pl.BlockSpec((1, lane_w), lambda i: (0, 0))]        # tiled bias
        operands = (x2, w_op, ones_bd, b_op)
    else:
        kernel = _attention_kernel_dense
        in_specs = [row_spec,
                    pl.BlockSpec((lane_w, lane_w), lambda i: (0, 0)),   # W.T, resident
                    pl.BlockSpec((1, lane_w), lambda i: (0, 0))]        # bias
        operands = (x2, w_op, b_op)

    out, attn = pl.pallas_call(
        kernel,
        out_shape=out_shape,
        grid_spec=pltpu.PrefetchScalarGridSpec(
            num_scalar_prefetch=0,
            grid=(n_blocks,),
            in_specs=in_specs,
            out_specs=[row_spec, row_spec],
        ),
        compiler_params=params,
    )(*operands)

    if rows_pad != rows:
        out, attn = out[:rows], attn[:rows]
    return out.reshape(B, S, D), attn.reshape(B, S, D)


# -----------------------------------------------------------------------------
# Self-test.
# -----------------------------------------------------------------------------
def _check(B, S, D, key):
    kx, kw, kb = jax.random.split(key, 3)
    x = jax.random.normal(kx, (B, S, D), dtype=jnp.float32)
    # Deterministic "nn.Linear(D, D)" parameters (synthetic init).
    weight = jax.random.normal(kw, (D, D), dtype=jnp.float32) * (1.0 / jnp.sqrt(D))
    bias = jax.random.normal(kb, (D,), dtype=jnp.float32) * 0.1

    out, attn = attention_mechanism(x, weight, bias)
    jax.block_until_ready((out, attn))

    attn_ref = jax.nn.softmax(x @ weight.T + bias, axis=-1)
    out_ref = x * attn_ref
    assert jnp.allclose(attn, attn_ref, atol=1e-5, rtol=1e-5), ("attn mismatch", B, S, D)
    assert jnp.allclose(out, out_ref, atol=1e-5, rtol=1e-5), ("out mismatch", B, S, D)


if __name__ == "__main__":
    key = jax.random.PRNGKey(0)
    k1, k2, k3 = jax.random.split(key, 3)
    _check(2, 8, 32, k1)      # toy size from the module spec: single lane-packed block
    _check(4, 1024, 32, k2)   # lane-packed path with a multi-step grid
    _check(2, 8, 96, k3)      # dense fallback path (D does not divide 128)
    print("KERNEL_OK")
</pallas_src>

<mosaic_0001>
module attributes {stable_mosaic.version = 11 : i64} {
  func.func @_attention_kernel_packed(%arg0: i32, %arg1: memref<4x128xf32, #tpu.memory_space<vmem>>, %arg2: memref<128x128xf32, #tpu.memory_space<vmem>>, %arg3: memref<128x128xf32, #tpu.memory_space<vmem>>, %arg4: memref<1x128xf32, #tpu.memory_space<vmem>>, %arg5: memref<4x128xf32, #tpu.memory_space<vmem>>, %arg6: memref<4x128xf32, #tpu.memory_space<vmem>>) attributes {dimension_semantics = [#tpu.dimension_semantics<parallel>], iteration_bounds = array<i64: 1>, scalar_prefetch = 0 : i64, scratch_operands = 0 : i64, tpu.core_type = #tpu.core_type<tc>, window_params = [{transform_indices = @transform_0, window_bounds = array<i64: 4, 128>}, {pipeline_mode = #tpu.pipeline_mode<synchronous>, transform_indices = @transform_1, window_bounds = array<i64: 128, 128>}, {pipeline_mode = #tpu.pipeline_mode<synchronous>, transform_indices = @transform_2, window_bounds = array<i64: 128, 128>}, {pipeline_mode = #tpu.pipeline_mode<synchronous>, transform_indices = @transform_3, window_bounds = array<i64: 1, 128>}, {transform_indices = @transform_4, window_bounds = array<i64: 4, 128>}, {transform_indices = @transform_5, window_bounds = array<i64: 4, 128>}]} {
    %c0 = arith.constant 0 : index
    %c0_0 = arith.constant 0 : index
    %0 = vector.load %arg1[%c0, %c0_0] : memref<4x128xf32, #tpu.memory_space<vmem>>, vector<4x128xf32>
    %c0_1 = arith.constant 0 : index
    %c0_2 = arith.constant 0 : index
    %1 = vector.load %arg2[%c0_1, %c0_2] : memref<128x128xf32, #tpu.memory_space<vmem>>, vector<128x128xf32>
    %cst = arith.constant dense<0.000000e+00> : vector<4x128xf32>
    %2 = tpu.matmul %0, %1, %cst {dimension_numbers = #tpu.dot_dimension_numbers<[1], [0], [0], [1], [0, 0, 1, 1], [], []>} : vector<4x128xf32>, vector<128x128xf32>, vector<4x128xf32> -> vector<4x128xf32>
    %c0_3 = arith.constant 0 : index
    %c0_4 = arith.constant 0 : index
    %3 = vector.load %arg4[%c0_3, %c0_4] : memref<1x128xf32, #tpu.memory_space<vmem>>, vector<1x128xf32>
    %4 = vector.broadcast %3 : vector<1x128xf32> to vector<4x128xf32>
    %5 = arith.addf %2, %4 : vector<4x128xf32>
    %c0_5 = arith.constant 0 : index
    %c0_6 = arith.constant 0 : index
    %6 = vector.load %arg3[%c0_5, %c0_6] : memref<128x128xf32, #tpu.memory_space<vmem>>, vector<128x128xf32>
    %7 = tpu.iota {dimensions = array<i32: 1>} : vector<4x128xi32>
    %c32_i32 = arith.constant 32 : i32
    %c0_i32 = arith.constant 0 : i32
    %8 = arith.cmpi eq, %c32_i32, %c0_i32 : i32
    %c1_i32 = arith.constant 1 : i32
    %9 = arith.select %8, %c1_i32, %c32_i32 : i32
    %10 = vector.broadcast %9 : i32 to vector<4x128xi32>
    %11 = arith.remsi %7, %10 : vector<4x128xi32>
    %c0_i32_7 = arith.constant 0 : i32
    %12 = vector.broadcast %c0_i32_7 : i32 to vector<4x128xi32>
    %13 = arith.cmpi ne, %11, %12 : vector<4x128xi32>
    %c0_i32_8 = arith.constant 0 : i32
    %14 = vector.broadcast %c0_i32_8 : i32 to vector<4x128xi32>
    %15 = arith.cmpi slt, %11, %14 : vector<4x128xi32>
    %c0_i32_9 = arith.constant 0 : i32
    %16 = arith.cmpi slt, %9, %c0_i32_9 : i32
    %17 = vector.broadcast %16 : i1 to vector<4x128xi1>
    %18 = vector.broadcast %17 : vector<4x128xi1> to vector<4x128xi1>
    %19 = arith.xori %15, %18 : vector<4x128xi1>
    %20 = arith.andi %19, %13 : vector<4x128xi1>
    %21 = vector.broadcast %9 : i32 to vector<4x128xi32>
    %22 = arith.addi %11, %21 : vector<4x128xi32>
    %23 = arith.select %20, %22, %11 : vector<4x128xi1>, vector<4x128xi32>
    %c1_i32_10 = arith.constant 1 : i32
    %24 = tpu.dynamic_rotate %5 by %c1_i32_10 dim 1 : vector<4x128xf32>, i32 -> vector<4x128xf32>
    %c97_i32 = arith.constant 97 : i32
    %25 = tpu.dynamic_rotate %5 by %c97_i32 dim 1 : vector<4x128xf32>, i32 -> vector<4x128xf32>
    %c1_i32_11 = arith.constant 1 : i32
    %26 = vector.broadcast %c1_i32_11 : i32 to vector<4x128xi32>
    %27 = arith.cmpi sge, %23, %26 : vector<4x128xi32>
    %28 = arith.select %27, %24, %25 : vector<4x128xi1>, vector<4x128xf32>
    %29 = arith.maximumf %5, %28 : vector<4x128xf32>
    %c2_i32 = arith.constant 2 : i32
    %30 = tpu.dynamic_rotate %29 by %c2_i32 dim 1 : vector<4x128xf32>, i32 -> vector<4x128xf32>
    %c98_i32 = arith.constant 98 : i32
    %31 = tpu.dynamic_rotate %29 by %c98_i32 dim 1 : vector<4x128xf32>, i32 -> vector<4x128xf32>
    %c2_i32_12 = arith.constant 2 : i32
    %32 = vector.broadcast %c2_i32_12 : i32 to vector<4x128xi32>
    %33 = arith.cmpi sge, %23, %32 : vector<4x128xi32>
    %34 = arith.select %33, %30, %31 : vector<4x128xi1>, vector<4x128xf32>
    %35 = arith.maximumf %29, %34 : vector<4x128xf32>
    %c4_i32 = arith.constant 4 : i32
    %36 = tpu.dynamic_rotate %35 by %c4_i32 dim 1 : vector<4x128xf32>, i32 -> vector<4x128xf32>
    %c100_i32 = arith.constant 100 : i32
    %37 = tpu.dynamic_rotate %35 by %c100_i32 dim 1 : vector<4x128xf32>, i32 -> vector<4x128xf32>
    %c4_i32_13 = arith.constant 4 : i32
    %38 = vector.broadcast %c4_i32_13 : i32 to vector<4x128xi32>
    %39 = arith.cmpi sge, %23, %38 : vector<4x128xi32>
    %40 = arith.select %39, %36, %37 : vector<4x128xi1>, vector<4x128xf32>
    %41 = arith.maximumf %35, %40 : vector<4x128xf32>
    %c8_i32 = arith.constant 8 : i32
    %42 = tpu.dynamic_rotate %41 by %c8_i32 dim 1 : vector<4x128xf32>, i32 -> vector<4x128xf32>
    %c104_i32 = arith.constant 104 : i32
    %43 = tpu.dynamic_rotate %41 by %c104_i32 dim 1 : vector<4x128xf32>, i32 -> vector<4x128xf32>
    %c8_i32_14 = arith.constant 8 : i32
    %44 = vector.broadcast %c8_i32_14 : i32 to vector<4x128xi32>
    %45 = arith.cmpi sge, %23, %44 : vector<4x128xi32>
    %46 = arith.select %45, %42, %43 : vector<4x128xi1>, vector<4x128xf32>
    %47 = arith.maximumf %41, %46 : vector<4x128xf32>
    %c16_i32 = arith.constant 16 : i32
    %48 = tpu.dynamic_rotate %47 by %c16_i32 dim 1 : vector<4x128xf32>, i32 -> vector<4x128xf32>
    %c112_i32 = arith.constant 112 : i32
    %49 = tpu.dynamic_rotate %47 by %c112_i32 dim 1 : vector<4x128xf32>, i32 -> vector<4x128xf32>
    %c16_i32_15 = arith.constant 16 : i32
    %50 = vector.broadcast %c16_i32_15 : i32 to vector<4x128xi32>
    %51 = arith.cmpi sge, %23, %50 : vector<4x128xi32>
    %52 = arith.select %51, %48, %49 : vector<4x128xi1>, vector<4x128xf32>
    %53 = arith.maximumf %47, %52 : vector<4x128xf32>
    %54 = arith.subf %5, %53 : vector<4x128xf32>
    %55 = math.exp %54 : vector<4x128xf32>
    %cst_16 = arith.constant dense<0.000000e+00> : vector<4x128xf32>
    %56 = tpu.matmul %55, %6, %cst_16 {dimension_numbers = #tpu.dot_dimension_numbers<[1], [0], [0], [1], [0, 0, 1, 1], [], []>} : vector<4x128xf32>, vector<128x128xf32>, vector<4x128xf32> -> vector<4x128xf32>
    %57 = tpu.reciprocal %56 {approx = true} : vector<4x128xf32> -> vector<4x128xf32>
    %58 = arith.mulf %56, %57 : vector<4x128xf32>
    %cst_17 = arith.constant 2.000000e+00 : f32
    %59 = vector.broadcast %cst_17 : f32 to vector<4x128xf32>
    %60 = arith.subf %59, %58 : vector<4x128xf32>
    %61 = arith.mulf %57, %60 : vector<4x128xf32>
    %62 = arith.mulf %55, %61 : vector<4x128xf32>
    %63 = arith.mulf %0, %62 : vector<4x128xf32>
    %c0_18 = arith.constant 0 : index
    %c0_19 = arith.constant 0 : index
    %64 = vector.load %arg5[%c0_18, %c0_19] : memref<4x128xf32, #tpu.memory_space<vmem>>, vector<4x128xf32>
    tpu.vector_store %arg5[%c0_18, %c0_19], %63 {strides = array<i32>} : memref<4x128xf32, #tpu.memory_space<vmem>>, vector<4x128xf32>,
    %c0_20 = arith.constant 0 : index
    %c0_21 = arith.constant 0 : index
    %65 = vector.load %arg6[%c0_20, %c0_21] : memref<4x128xf32, #tpu.memory_space<vmem>>, vector<4x128xf32>
    tpu.vector_store %arg6[%c0_20, %c0_21], %62 {strides = array<i32>} : memref<4x128xf32, #tpu.memory_space<vmem>>, vector<4x128xf32>,
    return
  }
  func.func @transform_0(%arg0: i32) -> (i32, i32) {
    %c0_i32 = arith.constant 0 : i32
    %c0_i32_0 = arith.constant 0 : i32
    return %arg0, %c0_i32 : i32, i32
  }
  func.func @transform_1(%arg0: i32) -> (i32, i32) {
    %c0_i32 = arith.constant 0 : i32
    %c0_i32_0 = arith.constant 0 : i32
    %c0_i32_1 = arith.constant 0 : i32
    return %c0_i32, %c0_i32_0 : i32, i32
  }
  func.func @transform_2(%arg0: i32) -> (i32, i32) {
    %c0_i32 = arith.constant 0 : i32
    %c0_i32_0 = arith.constant 0 : i32
    %c0_i32_1 = arith.constant 0 : i32
    return %c0_i32, %c0_i32_0 : i32, i32
  }
  func.func @transform_3(%arg0: i32) -> (i32, i32) {
    %c0_i32 = arith.constant 0 : i32
    %c0_i32_0 = arith.constant 0 : i32
    %c0_i32_1 = arith.constant 0 : i32
    return %c0_i32, %c0_i32_0 : i32, i32
  }
  func.func @transform_4(%arg0: i32) -> (i32, i32) {
    %c0_i32 = arith.constant 0 : i32
    %c0_i32_0 = arith.constant 0 : i32
    return %arg0, %c0_i32 : i32, i32
  }
  func.func @transform_5(%arg0: i32) -> (i32, i32) {
    %c0_i32 = arith.constant 0 : i32
    %c0_i32_0 = arith.constant 0 : i32
    return %arg0, %c0_i32 : i32, i32
  }
}

</mosaic_0001>

<bundles_post_ra>
// kernel: tpu_custom_call.1
= control target key start
LH: loop header
LB: loop body
LE: loop exit
PB: predicated region body
PF: predicated region fallthrough
CT: control target
= control target key end

     0   :  { %11 = vsyncpa [#allocation3], 0  ;;  %s685_s0 = inlined_call_operand.hbm [shape: f32[4,128], index: 0, kind: input, shape index: {}]   ;;  %s686_s1 = inlined_call_operand.hbm [shape: f32[128,128], index: 1, kind: input, shape index: {}]   ;;  %s687_s2 = inlined_call_operand.hbm [shape: f32[128,128], index: 2, kind: input, shape index: {}]   ;;  %s688_s3 = inlined_call_operand.vmem [shape: f32[1,128], index: 3, kind: input, shape index: {}]   ;;  %s689_s4 = inlined_call_operand.hbm [shape: f32[4,128], index: 4, kind: output, shape index: {0}]   ;;  %s690_s5 = inlined_call_operand.hbm [shape: f32[4,128], index: 5, kind: output, shape index: {1}]  }
   0x1   :  { %12 = vsyncpa [#allocation6], 0 }
   0x2   :  { %13 = vsyncpa [#allocation4], 0 }
   0x3   :  { %14 = vsyncpa [#allocation10], 0  ;;  %s565_s18 = smov [#allocation5]  }
   0x4   :  { %s30_s19 = sshll.u32 %s565_s18, 4  ;;  %s31_s19 = int_to_ptr.vmem [resolvable:$true] %s30_s19 }
   0x5   :  { %s465_s20 = scalar_lea.vmem %s31_s19, 2048  ;;  %p470_p1 = scmp.lt.s32.totalorder %s31_s19, %s31_s19 }
   0x6   :  { %p466_p0 = scmp.ne.s32.totalorder %s31_s19, %s465_s20  ;;  %p471_p2 = scmp.lt.s32.totalorder %s465_s20, %s465_s20 }
   0x8   :  { %p472_p3 = por %p471_p2, %p470_p1 }
   0xa   :  { %p473_p4 = pnand %p472_p3, %p466_p0 }
   0xc   :  { %476 = shalt.err (!%p473_p4)
}
   0xd   :  { %s566_s21 = smov 128   ;;  %s567_s22 = smov 8  }
   0xe   :  { %36 = dma.hbm_to_vmem [thread:$0]  %s686_s1, 2048, %s31_s19, [#allocation6], %s566_s21, %s566_s21, %s567_s22  }
   0xf   :  { %s568_s25 = smov [#allocation2]   ;;  %s569_s27 = smov [#allocation7]  }
  0x10   :  { %s21_s26 = sshll.u32 %s568_s25, 4  ;;  %s42_s28 = sshll.u32 %s569_s27, 4  ;;  %s22_s26 = int_to_ptr.vmem [resolvable:$true] %s21_s26  ;;  %s43_s28 = int_to_ptr.vmem [resolvable:$true] %s42_s28 }
  0x11   :  { %s485_s29 = scalar_lea.vmem %s22_s26, 64  ;;  %p490_p6 = scmp.lt.s32.totalorder %s22_s26, %s22_s26 }
  0x12   :  { %p486_p5 = scmp.ne.s32.totalorder %s22_s26, %s485_s29  ;;  %p491_p7 = scmp.lt.s32.totalorder %s485_s29, %s485_s29 }
  0x14   :  { %p492_p8 = por %p491_p7, %p490_p6 }
  0x16   :  { %p493_p9 = pnand %p492_p8, %p486_p5 }
  0x18   :  { %496 = shalt.err (!%p493_p9)
}
  0x19   :  { %24 = dma.hbm_to_vmem [thread:$0]  %s685_s0, 64, %s22_s26, [#allocation3]  }
  0x1a   :  { %s505_s7 = scalar_lea.vmem %s43_s28, 2048  ;;  %p510_p11 = scmp.lt.s32.totalorder %s43_s28, %s43_s28 }
  0x1b   :  { %p506_p10 = scmp.ne.s32.totalorder %s43_s28, %s505_s7  ;;  %p511_p12 = scmp.lt.s32.totalorder %s505_s7, %s505_s7 }
  0x1d   :  { %p512_p13 = por %p511_p12, %p510_p11 }
  0x1f   :  { %p513_p0 = pnand %p512_p13, %p506_p10 }
  0x21   :  { %516 = shalt.err (!%p513_p0)
}
  0x22   :  { %48 = dma.hbm_to_vmem [thread:$0]  %s687_s2, 2048, %s43_s28, [#allocation6], %s566_s21, %s566_s21, %s567_s22  }
  0x23   :  { %557 = dma.done.wait [#allocation3], 64  }
  0x24   :  { %558 = vsyncadd [#allocation3], 4294967232 }
  0x25   :  { %559 = dma.done.wait [#allocation6], 4096  }
  0x26   :  { %560 = vsyncadd [#allocation6], 4294963200  ;;  %v570_v0 = vmov 0.0   ;;  %vm571_vm0 = vmmov 0   ;;  %v76_v1 = vld [vmem:[#allocation5 + $0x78] sm:$0xff]  ;;  %v75_v2 = vld [vmem:[#allocation5 + $0x70] sm:$0xff]  ;;  %v170_v22 = vlaneseq }
  0x27   :  { %365 = vmatprep.subr.mxu0 %v570_v0  ;;  %397 = vmatprep.mubr.msk.f32.mxu0 %vm571_vm0, %v570_v0  ;;  %v74_v3 = vld [vmem:[#allocation5 + $0x68] sm:$0xff]  ;;  %v73_v4 = vld [vmem:[#allocation5 + $0x60] sm:$0xff]  ;;  %v72_v5 = vld [vmem:[#allocation5 + $0x58] sm:$0xff]  ;;  %s572_s9 = smov 1   ;;  %s573_s10 = smov 97  }
  0x28   :  { %400 = vmatprep.subr.mxu1 %v570_v0  ;;  %432 = vmatprep.mubr.msk.f32.mxu1 %vm571_vm0, %v570_v0  ;;  %v71_v6 = vld [vmem:[#allocation5 + $0x50] sm:$0xff]  ;;  %v70_v7 = vld [vmem:[#allocation5 + $0x48] sm:$0xff]  ;;  %v69_v8 = vld [vmem:[#allocation5 + $0x40] sm:$0xff]  ;;  %v171_v23 = vand.u32 127, %v170_v22  ;;  %s575_s11 = smov 98   ;;  %s576_s12 = smov 100  }
  0x29   :  { %366 = vmatpush3.msra.mxu0 %v76_v1  ;;  %v68_v9 = vld [vmem:[#allocation5 + $0x38] sm:$0xff]  ;;  %v67_v10 = vld [vmem:[#allocation5 + $0x30] sm:$0xff]  ;;  %v66_v11 = vld [vmem:[#allocation5 + $0x28] sm:$0xff]  ;;  %s577_s13 = smov 4   ;;  %s578_s14 = smov 104  }
  0x2a   :  { %367 = vmatprep.subr.mxu0 %v570_v0  ;;  %v65_v12 = vld [vmem:[#allocation5 + $0x20] sm:$0xff]  ;;  %v64_v13 = vld [vmem:[#allocation5 + $0x18] sm:$0xff]  ;;  %v63_v14 = vld [vmem:[#allocation5 + $0x10] sm:$0xff]  ;;  %v653_v24 = vand.u32 31, %v171_v23  ;;  %s579_s15 = smov 112   ;;  %s580_s16 = smov 16  }
  0x2b   :  { %368 = vmatpush3.msra.mxu0 %v75_v2  ;;  %v62_v15 = vld [vmem:[#allocation5 + $0x8] sm:$0xff]  ;;  %v61_v16 = vld [vmem:[#allocation5] sm:$0xff]  ;;  %v642_v17 = vld [vmem:[#allocation2] sm:$0xf]  ;;  %s581_s17 = smov [#allocation9]   ;;  %s582_s19 = smov [#allocation8]  }
  0x2c   :  { %369 = vmatprep.subr.mxu0 %v570_v0  ;;  %v330_v18 = vld [vmem:[%s688_s3] ss:$0 sm:$0xff]  ;;  %vm188_vm1 = vcmp.ge.s32.totalorder %v653_v24, 1  ;;  %s574_s3 = smov 2   ;;  %vm195_vm2 = vcmp.ge.s32.totalorder %v653_v24, 2  ;;  %v168_v34 = vld [vmem:[#allocation7 + $0x70] sm:$0xff] }
  0x2d   :  { %370 = vmatpush3.msra.mxu0 %v74_v3  ;;  %v169_v33 = vld [vmem:[#allocation7 + $0x78] sm:$0xff]  ;;  %v167_v35 = vld [vmem:[#allocation7 + $0x68] sm:$0xff]  ;;  %vm202_vm3 = vcmp.ge.s32.totalorder %v653_v24, 4  ;;  %v166_v36 = vld [vmem:[#allocation7 + $0x60] sm:$0xff]  ;;  %vm209_vm4 = vcmp.ge.s32.totalorder %v653_v24, 8  ;;  %vm216_vm5 = vcmp.ge.s32.totalorder %v653_v24, 16 }
  0x2e   :  { %371 = vmatprep.subr.mxu0 %v570_v0  ;;  %401 = vmatpush3.msra.mxu1 %v169_v33  ;;  %v165_v39 = vld [vmem:[#allocation7 + $0x58] sm:$0xff]  ;;  %v164_v42 = vld [vmem:[#allocation7 + $0x50] sm:$0xff]  ;;  %v163_v43 = vld [vmem:[#allocation7 + $0x48] sm:$0xff]  ;;  %s316_s18 = sshll.u32 %s581_s17, 4  ;;  %s306_s20 = sshll.u32 %s582_s19, 4  ;;  %s317_s18 = int_to_ptr.vmem [resolvable:$true] %s316_s18  ;;  %s307_s20 = int_to_ptr.vmem [resolvable:$true] %s306_s20 }
  0x2f   :  { %372 = vmatpush3.msra.mxu0 %v73_v4  ;;  %402 = vmatprep.subr.mxu1 %v570_v0  ;;  %v162_v44 = vld [vmem:[#allocation7 + $0x40] sm:$0xff]  ;;  %v161_v45 = vld [vmem:[#allocation7 + $0x38] sm:$0xff]  ;;  %v160_v46 = vld [vmem:[#allocation7 + $0x30] sm:$0xff]  ;;  %s517_s21 = scalar_lea.vmem %s317_s18, 64  ;;  %p522_p2 = scmp.lt.s32.totalorder %s317_s18, %s317_s18 }
  0x30   :  { %373 = vmatprep.subr.mxu0 %v570_v0  ;;  %403 = vmatpush3.msra.mxu1 %v168_v34  ;;  %v159_v47 = vld [vmem:[#allocation7 + $0x28] sm:$0xff]  ;;  %v158_v50 = vld [vmem:[#allocation7 + $0x20] sm:$0xff]  ;;  %v157_v53 = vld [vmem:[#allocation7 + $0x18] sm:$0xff]  ;;  %p518_p1 = scmp.ne.s32.totalorder %s317_s18, %s517_s21  ;;  %p523_p3 = scmp.lt.s32.totalorder %s517_s21, %s517_s21 }
  0x31   :  { %374 = vmatpush3.msra.mxu0 %v72_v5  ;;  %404 = vmatprep.subr.mxu1 %v570_v0  ;;  %v156_v54 = vld [vmem:[#allocation7 + $0x10] sm:$0xff]  ;;  %v155_v55 = vld [vmem:[#allocation7 + $0x8] sm:$0xff]  ;;  %v154_v56 = vld [vmem:[#allocation7] sm:$0xff] }
  0x32   :  { %375 = vmatprep.subr.mxu0 %v570_v0  ;;  %405 = vmatpush3.msra.mxu1 %v167_v35  ;;  %p524_p4 = por %p523_p3, %p522_p2 }
  0x33   :  { %376 = vmatpush3.msra.mxu0 %v71_v6  ;;  %406 = vmatprep.subr.mxu1 %v570_v0 }
  0x34   :  { %377 = vmatprep.subr.mxu0 %v570_v0  ;;  %407 = vmatpush3.msra.mxu1 %v166_v36  ;;  %p525_p5 = pnand %p524_p4, %p518_p1 }
  0x35   :  { %378 = vmatpush3.msra.mxu0 %v70_v7  ;;  %408 = vmatprep.subr.mxu1 %v570_v0 }
  0x36   :  { %379 = vmatprep.subr.mxu0 %v570_v0  ;;  %409 = vmatpush3.msra.mxu1 %v165_v39 }
  0x37   :  { %380 = vmatpush3.msra.mxu0 %v69_v8  ;;  %410 = vmatprep.subr.mxu1 %v570_v0 }
  0x38   :  { %381 = vmatprep.subr.mxu0 %v570_v0  ;;  %411 = vmatpush3.msra.mxu1 %v164_v42 }
  0x39   :  { %382 = vmatpush3.msra.mxu0 %v68_v9  ;;  %412 = vmatprep.subr.mxu1 %v570_v0 }
  0x3a   :  { %383 = vmatprep.subr.mxu0 %v570_v0  ;;  %413 = vmatpush3.msra.mxu1 %v163_v43 }
  0x3b   :  { %384 = vmatpush3.msra.mxu0 %v67_v10  ;;  %414 = vmatprep.subr.mxu1 %v570_v0 }
  0x3c   :  { %385 = vmatprep.subr.mxu0 %v570_v0  ;;  %415 = vmatpush3.msra.mxu1 %v162_v44 }
  0x3d   :  { %386 = vmatpush3.msra.mxu0 %v66_v11  ;;  %416 = vmatprep.subr.mxu1 %v570_v0 }
  0x3e   :  { %387 = vmatprep.subr.mxu0 %v570_v0  ;;  %417 = vmatpush3.msra.mxu1 %v161_v45 }
  0x3f   :  { %388 = vmatpush3.msra.mxu0 %v65_v12  ;;  %418 = vmatprep.subr.mxu1 %v570_v0 }
  0x40   :  { %389 = vmatprep.subr.mxu0 %v570_v0  ;;  %419 = vmatpush3.msra.mxu1 %v160_v46 }
  0x41   :  { %390 = vmatpush3.msra.mxu0 %v64_v13  ;;  %420 = vmatprep.subr.mxu1 %v570_v0 }
  0x42   :  { %391 = vmatprep.subr.mxu0 %v570_v0  ;;  %421 = vmatpush3.msra.mxu1 %v159_v47 }
  0x43   :  { %392 = vmatpush3.msra.mxu0 %v63_v14  ;;  %422 = vmatprep.subr.mxu1 %v570_v0 }
  0x44   :  { %393 = vmatprep.subr.mxu0 %v570_v0  ;;  %423 = vmatpush3.msra.mxu1 %v158_v50 }
  0x45   :  { %394 = vmatpush3.msra.mxu0 %v62_v15  ;;  %424 = vmatprep.subr.mxu1 %v570_v0 }
  0x46   :  { %395 = vmatprep.subr.mxu0 %v570_v0  ;;  %425 = vmatpush3.msra.mxu1 %v157_v53 }
  0x47   :  { %396 = vmatpush3.msra.mxu0 %v61_v16  ;;  %426 = vmatprep.subr.mxu1 %v570_v0 }
  0x48   :  { %398 = vmatmul.mubr.f32.vlgmr.msra.gmra.mxu0 %v642_v17  ;;  %427 = vmatpush3.msra.mxu1 %v156_v54 }
  0x49   :  { %428 = vmatprep.subr.mxu1 %v570_v0 }
  0x4a   :  { %429 = vmatpush3.msra.mxu1 %v155_v55 }
  0x4b   :  { %430 = vmatprep.subr.mxu1 %v570_v0 }
  0x4c   :  { %431 = vmatpush3.msra.mxu1 %v154_v56 }
 0x108   :  { %v150_v19 = vpop.f32.mrf.mxu0 }
 0x109   :  { %v649_v20 = vadd.f32 %v330_v18, %v150_v19 }
 0x10a   :  { %v399_v21 = vpop.f32.mrf.mxu0 }
 0x10b   :  { %184 = vrot.lane.b32.xlu0 %v649_v20, %s572_s9 }
 0x10f   :  { %186 = vrot.lane.b32.xlu0 %v649_v20, %s573_s10 }
 0x17d   :  { %v185_v25 = vpop.permute.xlu0 %184 }
 0x181   :  { %v187_v26 = vpop.permute.xlu0 %186 }
 0x182   :  { %v189_v27 = vsel %vm188_vm1, %v185_v25, %v187_v26 }
 0x183   :  { %v190_v28 = vmax.f32 %v649_v20, %v189_v27 }
 0x185   :  { %191 = vrot.lane.b32.xlu1 %v190_v28, %s574_s3 }
 0x189   :  { %193 = vrot.lane.b32.xlu1 %v190_v28, %s575_s11 }
 0x1f7   :  { %v192_v29 = vpop.permute.xlu1 %191 }
 0x1fb   :  { %v194_v30 = vpop.permute.xlu1 %193 }
 0x1fc   :  { %v196_v31 = vsel %vm195_vm2, %v192_v29, %v194_v30 }
 0x1fd   :  { %v197_v32 = vmax.f32 %v190_v28, %v196_v31 }
 0x1ff   :  { %200 = vrot.lane.b32.xlu1 %v197_v32, %s576_s12  ;;  %198 = vrot.lane.b32.xlu0 %v197_v32, %s577_s13 }
 0x271   :  { %v201_v37 = vpop.permute.xlu1 %200  ;;  %v199_v38 = vpop.permute.xlu0 %198 }
 0x272   :  { %v203_v40 = vsel %vm202_vm3, %v199_v38, %v201_v37 }
 0x273   :  { %v204_v41 = vmax.f32 %v197_v32, %v203_v40 }
 0x275   :  { %207 = vrot.lane.b32.xlu1 %v204_v41, %s578_s14  ;;  %205 = vrot.lane.b32.xlu0 %v204_v41, %s567_s22 }
 0x2e7   :  { %v208_v48 = vpop.permute.xlu1 %207  ;;  %v206_v49 = vpop.permute.xlu0 %205 }
 0x2e8   :  { %v210_v51 = vsel %vm209_vm4, %v206_v49, %v208_v48 }
 0x2e9   :  { %v211_v52 = vmax.f32 %v204_v41, %v210_v51 }
 0x2eb   :  { %214 = vrot.lane.b32.xlu1 %v211_v52, %s579_s15  ;;  %212 = vrot.lane.b32.xlu0 %v211_v52, %s580_s16 }
 0x35d   :  { %v215_v57 = vpop.permute.xlu1 %214  ;;  %v213_v58 = vpop.permute.xlu0 %212 }
 0x35e   :  { %v217_v59 = vsel %vm216_vm5, %v213_v58, %v215_v57 }
 0x35f   :  { %v218_v60 = vmax.f32 %v211_v52, %v217_v59 }
 0x361   :  { %v219_v61 = vsub.f32 %v649_v20, %v218_v60 }
 0x363   :  { %v220_v62 = vmul.f32 1.442695, %v219_v61 }
 0x365   :  { %453 = vpow2.f32 %v220_v62 }
 0x372   :  { %v454_v63 = vpop.eup %453 }
 0x373   :  { %433 = vmatmul.mubr.f32.vlgmr.msra.gmra.mxu1 %v454_v63 }
 0x433   :  { %v288_v1 = vpop.f32.mrf.mxu1 }
 0x434   :  { %455 = vrcp.f32 %v288_v1 }
 0x435   :  { %v434_v2 = vpop.f32.mrf.mxu1 }
 0x441   :  { %v456_v3 = vpop.eup %455 }
 0x442   :  { %v293_v4 = vmul.f32 %v456_v3, %v288_v1 }
 0x444   :  { %v294_v5 = vsub.f32 2.0, %v293_v4 }
 0x446   :  { %v295_v0 = vmul.f32 %v456_v3, %v294_v5 }
 0x448   :  { %v296_v6 = vmul.f32 %v454_v63, %v295_v0 }
 0x44a   :  { %v297_v7 = vmul.f32 %v296_v6, %v642_v17  ;;  %299 = vst [vmem:[#allocation9] sm:$0xf] %v296_v6 }
 0x44b   :  { %528 = shalt.err (!%p525_p5)
}
 0x44c   :  { %319 = dma.vmem_to_hbm [thread:$0]  %s317_s18, 64, %s690_s5, [#allocation10]   ;;  %298 = vst [vmem:[#allocation8] sm:$0xf] %v297_v7 }
 0x44d   :  { %s537_s24 = scalar_lea.vmem %s307_s20, 64  ;;  %p542_p7 = scmp.lt.s32.totalorder %s307_s20, %s307_s20 }
 0x44e   :  { %p538_p6 = scmp.ne.s32.totalorder %s307_s20, %s537_s24  ;;  %p543_p8 = scmp.lt.s32.totalorder %s537_s24, %s537_s24 }
 0x450   :  { %p544_p9 = por %p543_p8, %p542_p7 }
 0x452   :  { %p545_p10 = pnand %p544_p9, %p538_p6 }
 0x454   :  { %548 = shalt.err (!%p545_p10)
}
 0x455   :  { %309 = dma.vmem_to_hbm [thread:$0]  %s307_s20, 64, %s689_s4, [#allocation4]  }
 0x456   :  { %561 = dma.done.wait [#allocation4], 64  }
 0x457   :  { %562 = vsyncadd [#allocation4], 4294967232 }
 0x458   :  { %563 = dma.done.wait [#allocation10], 64  }
 0x459   :  { %564 = vsyncadd [#allocation10], 4294967232 }
 0x45a   :  { %326 = vsyncpa [#allocation3], 1 }
 0x45b   :  { %327 = vsyncpa [#allocation6], 1 }
 0x45c   :  { %328 = vsyncpa [#allocation4], 1 }
 0x45d   :  { %329 = vsyncpa [#allocation10], 1 }

</bundles_post_ra>
